<compile_context>
chip_gen: v6e
topology: v6e:2x2x1
jax: 0.10.0
libtpu: 0.0.40
codegen_flags: <defaults>
</compile_context>

<pallas_src>
import functools
import numpy as np
import jax
import jax.numpy as jnp
from jax import lax
from jax.experimental import pallas as pl
from jax.experimental.pallas import tpu as pltpu

KERNEL_SIZE = 3            # CSPN kernel size k
K2 = KERNEL_SIZE ** 2      # 9
BRANCH = 3
BN_EPS = 1e-5
AFF_EPS = 1e-8


def _fusion_kernel(w_ref, b_ref, red_ref, cmask_ref,
                   o1_ref, o2_ref, o3_ref, out_ref, *, width):
    # w_ref    : VMEM (27, 27)   block-diag conv weights, row/col = c*3 + branch
    # b_ref    : VMEM (27, 1)    conv biases (BN folded), row = c*3 + branch
    # red_ref  : VMEM (2, D)     [disparity iota ; ones] soft-argmin reducer
    # cmask_ref: VMEM (2, HW)    column masks [col != 0 ; col != W-1]
    # o*_ref   : VMEM (1, D, HW) cost volume for the current batch element
    # out_ref  : VMEM (1, 1, HW) fused disparity map
    _, D, HW = o1_ref.shape
    W = width

    red_w = red_ref[...]                                   # (2, D)

    def soft_argmin(vol_ref):
        x = vol_ref[0]                                     # (D, HW) f32
        m = jnp.max(x, axis=0, keepdims=True)              # (1, HW)  XLU
        e = jnp.exp(x - m)                                 # (D, HW)  EUP
        nd = jnp.dot(red_w, e,
                     preferred_element_type=jnp.float32)   # (2, HW)  MXU
        return nd[0:1] * pl.reciprocal(nd[1:2])            # (1, HW)

    # Branch-stacked soft-argmin maps: row = branch.
    d_all = jnp.concatenate(
        [soft_argmin(o1_ref), soft_argmin(o2_ref), soft_argmin(o3_ref)],
        axis=0)                                            # (3, HW)

    # Zero-padding boundary masks.  Row masks from the flat lane index
    # (in-kernel iota); column masks are a tiny precomputed input.
    lane = lax.broadcasted_iota(jnp.int32, (1, HW), 1)
    not_top = (lane >= W).astype(jnp.float32)              # row - 1 >= 0
    not_bot = (lane < HW - W).astype(jnp.float32)          # row + 1 <  H
    not_left = cmask_ref[0:1]                              # col - 1 >= 0
    not_right = cmask_ref[1:2]                             # col + 1 <  W

    # 9 zero-padded neighbour taps on the branch-stacked map (8 XLU rolls).
    # taps_all row layout: c*3 + branch  (matches w_ref / b_ref rows).
    taps = []
    for c in range(K2):
        dy = c // KERNEL_SIZE - 1
        dx = c % KERNEL_SIZE - 1
        if dy == 0 and dx == 0:
            t = d_all                                      # center tap
        else:
            s = dy * W + dx                                # flat shift
            t = pltpu.roll(d_all, shift=(-s) % HW, axis=1)  # t[i] = d[i + s]
            if dy < 0:
                t = t * not_top
            elif dy > 0:
                t = t * not_bot
            if dx < 0:
                t = t * not_left
            elif dx > 0:
                t = t * not_right
        taps.append(t)
    taps_all = jnp.concatenate(taps, axis=0)               # (27, HW)

    # Fused BasicConv (3x3, BN folded) + ReLU for all branches: one MXU matmul.
    aff = jnp.dot(w_ref[...], taps_all,
                  preferred_element_type=jnp.float32)      # (27, HW)
    aff = jnp.maximum(aff + b_ref[...], 0.0)               # affinities >= 0

    # CSPN-3D aggregation: |aff| == aff post-ReLU.
    denom = jnp.sum(aff, axis=0, keepdims=True) + AFF_EPS  # (1, HW)
    fused = jnp.sum(aff * taps_all, axis=0, keepdims=True)  # (1, HW)
    out_ref[0] = (fused * pl.reciprocal(denom)).astype(out_ref.dtype)


def disparity_fusion(out_1, out_2, out_3, conv_w, conv_b):
    B, D, H, W = out_1.shape
    HW = H * W

    # Fold eval-mode BN (init running stats: mean=0, var=1) into conv w/b.
    bn_scale = 1.0 / float(np.sqrt(1.0 + BN_EPS))
    w = conv_w.astype(jnp.float32).reshape(BRANCH, K2, K2) * bn_scale  # (3,9,9)
    b = conv_b.astype(jnp.float32) * bn_scale                          # (3,9)

    # Block-diagonal (27, 27) weight matrix, rows/cols ordered c*3 + branch:
    #   w_all[co*3+br, ci*3+br] = w[br, co, ci]
    eye = jnp.eye(BRANCH, dtype=jnp.float32)
    w_all = jnp.einsum('bij,bc->ibjc', w, eye).reshape(BRANCH * K2, BRANCH * K2)
    b_all = b.T.reshape(BRANCH * K2, 1)                                # (27,1)

    # Soft-argmin reducer: [disparity iota ; ones]  ->  (num ; den) via MXU.
    red_w = jnp.stack([jnp.arange(D, dtype=jnp.float32),
                       jnp.ones((D,), jnp.float32)], axis=0)           # (2, D)

    # Column boundary masks (row masks are built in-kernel from a lane iota).
    col = np.arange(HW, dtype=np.int64) % W
    col_masks = jnp.asarray(
        np.stack([col != 0, col != W - 1], axis=0).astype(np.float32))  # (2,HW)

    # Lane-dense layout: W stays innermost; H*W maps to the lane dimension.
    v1 = out_1.reshape(B, D, HW)
    v2 = out_2.reshape(B, D, HW)
    v3 = out_3.reshape(B, D, HW)

    vol_spec = pl.BlockSpec((1, D, HW), lambda bb: (bb, 0, 0))

    def const_spec(shape):
        return pl.BlockSpec(shape, lambda bb: (0, 0))

    fused = pl.pallas_call(
        functools.partial(_fusion_kernel, width=W),
        out_shape=jax.ShapeDtypeStruct((B, 1, HW), jnp.float32),
        grid=(B,),
        in_specs=[
            const_spec((BRANCH * K2, BRANCH * K2)),   # w_all
            const_spec((BRANCH * K2, 1)),             # b_all
            const_spec((2, D)),                       # soft-argmin reducer
            const_spec((2, HW)),                      # column masks
            vol_spec, vol_spec, vol_spec,
        ],
        out_specs=pl.BlockSpec((1, 1, HW), lambda bb: (bb, 0, 0)),
        compiler_params=pltpu.CompilerParams(
            dimension_semantics=("parallel",)),   # batch splits across TCs (v7x)
    )(w_all, b_all, red_w, col_masks, v1, v2, v3)
    return fused.reshape(B, H, W)


def reference(out_1, out_2, out_3, conv_w, conv_b):
    def soft_disp(x):
        p = jax.nn.softmax(x, axis=1)
        d = jnp.arange(x.shape[1], dtype=jnp.float32)[None, :, None, None]
        return jnp.sum(p * d, axis=1)                      # (B, H, W)

    d1, d2, d3 = soft_disp(out_1), soft_disp(out_2), soft_disp(out_3)
    bn_scale = 1.0 / float(np.sqrt(1.0 + BN_EPS))

    def basic_conv(d, w_br, b_br):
        y = lax.conv_general_dilated(
            d[:, None], w_br, (1, 1), 'SAME',
            dimension_numbers=('NCHW', 'OIHW', 'NCHW'))
        y = (y + b_br[None, :, None, None]) * bn_scale
        return jnp.maximum(y, 0.0)

    aff = jnp.concatenate([basic_conv(d1, conv_w[0], conv_b[0]),
                           basic_conv(d2, conv_w[1], conv_b[1]),
                           basic_conv(d3, conv_w[2], conv_b[2])], axis=1)
    denom = jnp.sum(jnp.abs(aff), axis=1) + AFF_EPS        # (B, H, W)

    B, H, W = d1.shape
    pyramid = jnp.stack([d1, d2, d3], axis=1)              # (B, 3, H, W)
    pad = jnp.pad(pyramid, ((0, 0), (0, 0), (1, 1), (1, 1)))
    fused = jnp.zeros((B, H, W), jnp.float32)
    for br in range(BRANCH):
        for c in range(K2):
            dy, dx = c // KERNEL_SIZE, c % KERNEL_SIZE
            fused = fused + aff[:, br * K2 + c] * pad[:, br, dy:dy + H, dx:dx + W]
    return fused / denom


if __name__ == "__main__":
    B, D, H, W = 2, 16, 16, 16          # max_disparity = D = 16
    key = jax.random.PRNGKey(0)
    k1, k2, k3, kw, kb = jax.random.split(key, 5)
    out_1 = jax.random.normal(k1, (B, D, H, W), jnp.float32)
    out_2 = jax.random.normal(k2, (B, D, H, W), jnp.float32)
    out_3 = jax.random.normal(k3, (B, D, H, W), jnp.float32)
    conv_w = 0.1 * jax.random.normal(
        kw, (BRANCH, K2, 1, KERNEL_SIZE, KERNEL_SIZE), jnp.float32)
    conv_b = 0.05 * jax.random.normal(kb, (BRANCH, K2), jnp.float32)

    fused = disparity_fusion(out_1, out_2, out_3, conv_w, conv_b)
    fused = jax.block_until_ready(fused)

    ref = reference(out_1, out_2, out_3, conv_w, conv_b)
    np.testing.assert_allclose(np.asarray(fused), np.asarray(ref),
                               rtol=1e-4, atol=1e-4)
    print("KERNEL_OK")
</pallas_src>

<mosaic_0001>
module attributes {stable_mosaic.version = 11 : i64} {
  func.func @_fusion_kernel(%arg0: i32, %arg1: memref<27x27xf32, #tpu.memory_space<vmem>>, %arg2: memref<27x1xf32, #tpu.memory_space<vmem>>, %arg3: memref<2x16xf32, #tpu.memory_space<vmem>>, %arg4: memref<2x256xf32, #tpu.memory_space<vmem>>, %arg5: memref<1x16x256xf32, #tpu.memory_space<vmem>>, %arg6: memref<1x16x256xf32, #tpu.memory_space<vmem>>, %arg7: memref<1x16x256xf32, #tpu.memory_space<vmem>>, %arg8: memref<1x1x256xf32, #tpu.memory_space<vmem>>) attributes {dimension_semantics = [#tpu.dimension_semantics<parallel>], iteration_bounds = array<i64: 2>, scalar_prefetch = 0 : i64, scratch_operands = 0 : i64, tpu.core_type = #tpu.core_type<tc>, window_params = [{pipeline_mode = #tpu.pipeline_mode<synchronous>, transform_indices = @transform_0, window_bounds = array<i64: 27, 27>}, {pipeline_mode = #tpu.pipeline_mode<synchronous>, transform_indices = @transform_1, window_bounds = array<i64: 27, 1>}, {pipeline_mode = #tpu.pipeline_mode<synchronous>, transform_indices = @transform_2, window_bounds = array<i64: 2, 16>}, {pipeline_mode = #tpu.pipeline_mode<synchronous>, transform_indices = @transform_3, window_bounds = array<i64: 2, 256>}, {transform_indices = @transform_4, window_bounds = array<i64: 1, 16, 256>}, {transform_indices = @transform_5, window_bounds = array<i64: 1, 16, 256>}, {transform_indices = @transform_6, window_bounds = array<i64: 1, 16, 256>}, {transform_indices = @transform_7, window_bounds = array<i64: 1, 1, 256>}]} {
    %c0 = arith.constant 0 : index
    %c0_0 = arith.constant 0 : index
    %0 = vector.load %arg3[%c0, %c0_0] : memref<2x16xf32, #tpu.memory_space<vmem>>, vector<2x16xf32>
    %c0_1 = arith.constant 0 : index
    %c0_2 = arith.constant 0 : index
    %c0_3 = arith.constant 0 : index
    %1 = vector.load %arg5[%c0_1, %c0_2, %c0_3] : memref<1x16x256xf32, #tpu.memory_space<vmem>>, vector<1x16x256xf32>
    %2 = vector.shape_cast %1 : vector<1x16x256xf32> to vector<16x256xf32>
    %cst = arith.constant dense<0xFF800000> : vector<256xf32>
    %3 = vector.multi_reduction <maximumf>, %2, %cst [0] : vector<16x256xf32> to vector<256xf32>
    %4 = vector.shape_cast %3 : vector<256xf32> to vector<1x256xf32>
    %5 = vector.broadcast %4 : vector<1x256xf32> to vector<16x256xf32>
    %6 = arith.subf %2, %5 : vector<16x256xf32>
    %7 = math.exp %6 : vector<16x256xf32>
    %cst_4 = arith.constant dense<0.000000e+00> : vector<2x256xf32>
    %8 = tpu.matmul %0, %7, %cst_4 {dimension_numbers = #tpu.dot_dimension_numbers<[1], [0], [0], [1], [0, 0, 1, 1], [], []>} : vector<2x16xf32>, vector<16x256xf32>, vector<2x256xf32> -> vector<2x256xf32>
    %9 = vector.extract_strided_slice %8 {offsets = [0, 0], sizes = [1, 256], strides = [1, 1]} : vector<2x256xf32> to vector<1x256xf32>
    %10 = vector.extract_strided_slice %8 {offsets = [1, 0], sizes = [1, 256], strides = [1, 1]} : vector<2x256xf32> to vector<1x256xf32>
    %11 = tpu.reciprocal %10 : vector<1x256xf32> -> vector<1x256xf32>
    %12 = arith.mulf %9, %11 : vector<1x256xf32>
    %c0_5 = arith.constant 0 : index
    %c0_6 = arith.constant 0 : index
    %c0_7 = arith.constant 0 : index
    %13 = vector.load %arg6[%c0_5, %c0_6, %c0_7] : memref<1x16x256xf32, #tpu.memory_space<vmem>>, vector<1x16x256xf32>
    %14 = vector.shape_cast %13 : vector<1x16x256xf32> to vector<16x256xf32>
    %cst_8 = arith.constant dense<0xFF800000> : vector<256xf32>
    %15 = vector.multi_reduction <maximumf>, %14, %cst_8 [0] : vector<16x256xf32> to vector<256xf32>
    %16 = vector.shape_cast %15 : vector<256xf32> to vector<1x256xf32>
    %17 = vector.broadcast %16 : vector<1x256xf32> to vector<16x256xf32>
    %18 = arith.subf %14, %17 : vector<16x256xf32>
    %19 = math.exp %18 : vector<16x256xf32>
    %cst_9 = arith.constant dense<0.000000e+00> : vector<2x256xf32>
    %20 = tpu.matmul %0, %19, %cst_9 {dimension_numbers = #tpu.dot_dimension_numbers<[1], [0], [0], [1], [0, 0, 1, 1], [], []>} : vector<2x16xf32>, vector<16x256xf32>, vector<2x256xf32> -> vector<2x256xf32>
    %21 = vector.extract_strided_slice %20 {offsets = [0, 0], sizes = [1, 256], strides = [1, 1]} : vector<2x256xf32> to vector<1x256xf32>
    %22 = vector.extract_strided_slice %20 {offsets = [1, 0], sizes = [1, 256], strides = [1, 1]} : vector<2x256xf32> to vector<1x256xf32>
    %23 = tpu.reciprocal %22 : vector<1x256xf32> -> vector<1x256xf32>
    %24 = arith.mulf %21, %23 : vector<1x256xf32>
    %c0_10 = arith.constant 0 : index
    %c0_11 = arith.constant 0 : index
    %c0_12 = arith.constant 0 : index
    %25 = vector.load %arg7[%c0_10, %c0_11, %c0_12] : memref<1x16x256xf32, #tpu.memory_space<vmem>>, vector<1x16x256xf32>
    %26 = vector.shape_cast %25 : vector<1x16x256xf32> to vector<16x256xf32>
    %cst_13 = arith.constant dense<0xFF800000> : vector<256xf32>
    %27 = vector.multi_reduction <maximumf>, %26, %cst_13 [0] : vector<16x256xf32> to vector<256xf32>
    %28 = vector.shape_cast %27 : vector<256xf32> to vector<1x256xf32>
    %29 = vector.broadcast %28 : vector<1x256xf32> to vector<16x256xf32>
    %30 = arith.subf %26, %29 : vector<16x256xf32>
    %31 = math.exp %30 : vector<16x256xf32>
    %cst_14 = arith.constant dense<0.000000e+00> : vector<2x256xf32>
    %32 = tpu.matmul %0, %31, %cst_14 {dimension_numbers = #tpu.dot_dimension_numbers<[1], [0], [0], [1], [0, 0, 1, 1], [], []>} : vector<2x16xf32>, vector<16x256xf32>, vector<2x256xf32> -> vector<2x256xf32>
    %33 = vector.extract_strided_slice %32 {offsets = [0, 0], sizes = [1, 256], strides = [1, 1]} : vector<2x256xf32> to vector<1x256xf32>
    %34 = vector.extract_strided_slice %32 {offsets = [1, 0], sizes = [1, 256], strides = [1, 1]} : vector<2x256xf32> to vector<1x256xf32>
    %35 = tpu.reciprocal %34 : vector<1x256xf32> -> vector<1x256xf32>
    %36 = arith.mulf %33, %35 : vector<1x256xf32>
    %37 = tpu.concatenate %12, %24, %36 in 0 : vector<1x256xf32>, vector<1x256xf32>, vector<1x256xf32> -> vector<3x256xf32>
    %38 = tpu.iota {dimensions = array<i32: 1>} : vector<1x256xi32>
    %c16_i32 = arith.constant 16 : i32
    %39 = vector.broadcast %c16_i32 : i32 to vector<1x256xi32>
    %40 = arith.cmpi sge, %38, %39 : vector<1x256xi32>
    %41 = arith.extui %40 : vector<1x256xi1> to vector<1x256xi32>
    %42 = arith.sitofp %41 : vector<1x256xi32> to vector<1x256xf32>
    %c240_i32 = arith.constant 240 : i32
    %43 = vector.broadcast %c240_i32 : i32 to vector<1x256xi32>
    %44 = arith.cmpi slt, %38, %43 : vector<1x256xi32>
    %45 = arith.extui %44 : vector<1x256xi1> to vector<1x256xi32>
    %46 = arith.sitofp %45 : vector<1x256xi32> to vector<1x256xf32>
    %c0_15 = arith.constant 0 : index
    %c0_16 = arith.constant 0 : index
    %47 = vector.load %arg4[%c0_15, %c0_16] : memref<2x256xf32, #tpu.memory_space<vmem>>, vector<1x256xf32>
    %c1 = arith.constant 1 : index
    %c0_17 = arith.constant 0 : index
    %48 = vector.load %arg4[%c1, %c0_17] : memref<2x256xf32, #tpu.memory_space<vmem>>, vector<1x256xf32>
    %c17_i32 = arith.constant 17 : i32
    %49 = tpu.dynamic_rotate %37 by %c17_i32 dim 1 : vector<3x256xf32>, i32 -> vector<3x256xf32>
    %50 = vector.broadcast %42 : vector<1x256xf32> to vector<3x256xf32>
    %51 = arith.mulf %49, %50 : vector<3x256xf32>
    %52 = vector.broadcast %47 : vector<1x256xf32> to vector<3x256xf32>
    %53 = arith.mulf %51, %52 : vector<3x256xf32>
    %c16_i32_18 = arith.constant 16 : i32
    %54 = tpu.dynamic_rotate %37 by %c16_i32_18 dim 1 : vector<3x256xf32>, i32 -> vector<3x256xf32>
    %55 = vector.broadcast %42 : vector<1x256xf32> to vector<3x256xf32>
    %56 = arith.mulf %54, %55 : vector<3x256xf32>
    %c15_i32 = arith.constant 15 : i32
    %57 = tpu.dynamic_rotate %37 by %c15_i32 dim 1 : vector<3x256xf32>, i32 -> vector<3x256xf32>
    %58 = vector.broadcast %42 : vector<1x256xf32> to vector<3x256xf32>
    %59 = arith.mulf %57, %58 : vector<3x256xf32>
    %60 = vector.broadcast %48 : vector<1x256xf32> to vector<3x256xf32>
    %61 = arith.mulf %59, %60 : vector<3x256xf32>
    %c1_i32 = arith.constant 1 : i32
    %62 = tpu.dynamic_rotate %37 by %c1_i32 dim 1 : vector<3x256xf32>, i32 -> vector<3x256xf32>
    %63 = vector.broadcast %47 : vector<1x256xf32> to vector<3x256xf32>
    %64 = arith.mulf %62, %63 : vector<3x256xf32>
    %c255_i32 = arith.constant 255 : i32
    %65 = tpu.dynamic_rotate %37 by %c255_i32 dim 1 : vector<3x256xf32>, i32 -> vector<3x256xf32>
    %66 = vector.broadcast %48 : vector<1x256xf32> to vector<3x256xf32>
    %67 = arith.mulf %65, %66 : vector<3x256xf32>
    %c241_i32 = arith.constant 241 : i32
    %68 = tpu.dynamic_rotate %37 by %c241_i32 dim 1 : vector<3x256xf32>, i32 -> vector<3x256xf32>
    %69 = vector.broadcast %46 : vector<1x256xf32> to vector<3x256xf32>
    %70 = arith.mulf %68, %69 : vector<3x256xf32>
    %71 = vector.broadcast %47 : vector<1x256xf32> to vector<3x256xf32>
    %72 = arith.mulf %70, %71 : vector<3x256xf32>
    %c240_i32_19 = arith.constant 240 : i32
    %73 = tpu.dynamic_rotate %37 by %c240_i32_19 dim 1 : vector<3x256xf32>, i32 -> vector<3x256xf32>
    %74 = vector.broadcast %46 : vector<1x256xf32> to vector<3x256xf32>
    %75 = arith.mulf %73, %74 : vector<3x256xf32>
    %c239_i32 = arith.constant 239 : i32
    %76 = tpu.dynamic_rotate %37 by %c239_i32 dim 1 : vector<3x256xf32>, i32 -> vector<3x256xf32>
    %77 = vector.broadcast %46 : vector<1x256xf32> to vector<3x256xf32>
    %78 = arith.mulf %76, %77 : vector<3x256xf32>
    %79 = vector.broadcast %48 : vector<1x256xf32> to vector<3x256xf32>
    %80 = arith.mulf %78, %79 : vector<3x256xf32>
    %81 = tpu.concatenate %53, %56, %61, %64, %37, %67, %72, %75, %80 in 0 : vector<3x256xf32>, vector<3x256xf32>, vector<3x256xf32>, vector<3x256xf32>, vector<3x256xf32>, vector<3x256xf32>, vector<3x256xf32>, vector<3x256xf32>, vector<3x256xf32> -> vector<27x256xf32>
    %c0_20 = arith.constant 0 : index
    %c0_21 = arith.constant 0 : index
    %82 = vector.load %arg1[%c0_20, %c0_21] : memref<27x27xf32, #tpu.memory_space<vmem>>, vector<27x27xf32>
    %cst_22 = arith.constant dense<0.000000e+00> : vector<27x256xf32>
    %83 = tpu.matmul %82, %81, %cst_22 {dimension_numbers = #tpu.dot_dimension_numbers<[1], [0], [0], [1], [0, 0, 1, 1], [], []>} : vector<27x27xf32>, vector<27x256xf32>, vector<27x256xf32> -> vector<27x256xf32>
    %c0_23 = arith.constant 0 : index
    %c0_24 = arith.constant 0 : index
    %84 = vector.load %arg2[%c0_23, %c0_24] : memref<27x1xf32, #tpu.memory_space<vmem>>, vector<27x1xf32>
    %85 = vector.broadcast %84 : vector<27x1xf32> to vector<27x256xf32>
    %86 = arith.addf %83, %85 : vector<27x256xf32>
    %cst_25 = arith.constant 0.000000e+00 : f32
    %87 = vector.broadcast %cst_25 : f32 to vector<27x256xf32>
    %88 = arith.maximumf %86, %87 : vector<27x256xf32>
    %cst_26 = arith.constant dense<0.000000e+00> : vector<256xf32>
    %89 = vector.multi_reduction <add>, %88, %cst_26 [0] : vector<27x256xf32> to vector<256xf32>
    %90 = vector.shape_cast %89 : vector<256xf32> to vector<1x256xf32>
    %cst_27 = arith.constant 9.99999993E-9 : f32
    %91 = vector.broadcast %cst_27 : f32 to vector<1x256xf32>
    %92 = arith.addf %90, %91 : vector<1x256xf32>
    %93 = arith.mulf %88, %81 : vector<27x256xf32>
    %cst_28 = arith.constant dense<0.000000e+00> : vector<256xf32>
    %94 = vector.multi_reduction <add>, %93, %cst_28 [0] : vector<27x256xf32> to vector<256xf32>
    %95 = vector.shape_cast %94 : vector<256xf32> to vector<1x256xf32>
    %96 = tpu.reciprocal %92 : vector<1x256xf32> -> vector<1x256xf32>
    %97 = arith.mulf %95, %96 : vector<1x256xf32>
    %c0_29 = arith.constant 0 : index
    %c0_30 = arith.constant 0 : index
    %c0_31 = arith.constant 0 : index
    %98 = vector.load %arg8[%c0_29, %c0_30, %c0_31] : memref<1x1x256xf32, #tpu.memory_space<vmem>>, vector<1x1x256xf32>
    %99 = vector.shape_cast %98 : vector<1x1x256xf32> to vector<1x256xf32>
    %100 = vector.shape_cast %97 : vector<1x256xf32> to vector<1x1x256xf32>
    tpu.vector_store %arg8[%c0_29, %c0_30, %c0_31], %100 {strides = array<i32>} : memref<1x1x256xf32, #tpu.memory_space<vmem>>, vector<1x1x256xf32>,
    return
  }
  func.func @transform_0(%arg0: i32) -> (i32, i32) {
    %c0_i32 = arith.constant 0 : i32
    %c0_i32_0 = arith.constant 0 : i32
    %c0_i32_1 = arith.constant 0 : i32
    return %c0_i32, %c0_i32_0 : i32, i32
  }
  func.func @transform_1(%arg0: i32) -> (i32, i32) {
    %c0_i32 = arith.constant 0 : i32
    %c0_i32_0 = arith.constant 0 : i32
    %c0_i32_1 = arith.constant 0 : i32
    return %c0_i32, %c0_i32_0 : i32, i32
  }
  func.func @transform_2(%arg0: i32) -> (i32, i32) {
    %c0_i32 = arith.constant 0 : i32
    %c0_i32_0 = arith.constant 0 : i32
    %c0_i32_1 = arith.constant 0 : i32
    return %c0_i32, %c0_i32_0 : i32, i32
  }
  func.func @transform_3(%arg0: i32) -> (i32, i32) {
    %c0_i32 = arith.constant 0 : i32
    %c0_i32_0 = arith.constant 0 : i32
    %c0_i32_1 = arith.constant 0 : i32
    return %c0_i32, %c0_i32_0 : i32, i32
  }
  func.func @transform_4(%arg0: i32) -> (i32, i32, i32) {
    %c0_i32 = arith.constant 0 : i32
    %c0_i32_0 = arith.constant 0 : i32
    %c0_i32_1 = arith.constant 0 : i32
    return %arg0, %c0_i32, %c0_i32_0 : i32, i32, i32
  }
  func.func @transform_5(%arg0: i32) -> (i32, i32, i32) {
    %c0_i32 = arith.constant 0 : i32
    %c0_i32_0 = arith.constant 0 : i32
    %c0_i32_1 = arith.constant 0 : i32
    return %arg0, %c0_i32, %c0_i32_0 : i32, i32, i32
  }
  func.func @transform_6(%arg0: i32) -> (i32, i32, i32) {
    %c0_i32 = arith.constant 0 : i32
    %c0_i32_0 = arith.constant 0 : i32
    %c0_i32_1 = arith.constant 0 : i32
    return %arg0, %c0_i32, %c0_i32_0 : i32, i32, i32
  }
  func.func @transform_7(%arg0: i32) -> (i32, i32, i32) {
    %c0_i32 = arith.constant 0 : i32
    %c0_i32_0 = arith.constant 0 : i32
    %c0_i32_1 = arith.constant 0 : i32
    return %arg0, %c0_i32, %c0_i32_0 : i32, i32, i32
  }
}

</mosaic_0001>

<bundles_post_ra>
// kernel: tpu_custom_call.1
= control target key start
LH: loop header
LB: loop body
LE: loop exit
PB: predicated region body
PF: predicated region fallthrough
CT: control target
= control target key end

     0   :  { %s2141_s0 = inlined_call_operand.vmem [shape: f32[27,27], index: 0, kind: input, shape index: {}]   ;;  %s2142_s1 = inlined_call_operand.vmem [shape: f32[27,1], index: 1, kind: input, shape index: {}]   ;;  %s2143_s2 = inlined_call_operand.hbm [shape: f32[2,16], index: 2, kind: input, shape index: {}]   ;;  %s2144_s3 = inlined_call_operand.vmem [shape: f32[2,256], index: 3, kind: input, shape index: {}]   ;;  %s2145_s4 = inlined_call_operand.hbm [shape: f32[2,16,256], index: 4, kind: input, shape index: {}]   ;;  %s2146_s5 = inlined_call_operand.hbm [shape: f32[2,16,256], index: 5, kind: input, shape index: {}]   ;;  %s2147_s6 = inlined_call_operand.hbm [shape: f32[2,16,256], index: 6, kind: input, shape index: {}]   ;;  %s2148_s7 = inlined_call_operand.hbm [shape: f32[2,1,256], index: 7, kind: output, shape index: {}]  }
   0x1   :  { %2164 = sst [smem:[#allocation19_spill]] %s2145_s4 }
   0x2   :  { %12 = vsyncpa [#allocation3], 0 }
   0x3   :  { %13 = vsyncpa [#allocation6], 0 }
   0x4   :  { %15 = vsyncpa [#allocation6 + $0x1], 0 }
   0x5   :  { %16 = vsyncpa [#allocation9], 0 }
   0x6   :  { %18 = vsyncpa [#allocation9 + $0x1], 0 }
   0x7   :  { %19 = vsyncpa [#allocation4], 0 }
   0x8   :  { %21 = vsyncpa [#allocation4 + $0x1], 0  ;;  %s1689_s24 = smov 0   ;;  %s1691_s25 = smov 0  }
   0x9   :  { %s1693_s26 = smov 0   ;;  %s1695_s27 = smov 0  }
   0xa LB: > { %2165 = sst [smem:[#allocation15_spill]] %s1629_s27  ;;  %s1710_s28 = sadd.s32 1, %s1629_s27   ;;  %s1629_s27 = sphi %s1695_s27, %s2191_s27   ;;  %s1625_s26 = sphi %s1693_s26, %s2195_s26   ;;  %s1621_s25 = sphi %s1691_s25, %s2194_s25   ;;  %s1617_s24 = sphi %s1689_s24, %s2193_s24  }
   0xb   : > { %2166 = sst [smem:[#allocation16_spill]] %s1710_s28  ;;  %s118_s29 = sadd.s32 1, %s1625_s26 }
   0xc   : > { %s115_s30 = ssub.s32 %s1629_s27, %s1710_s28  ;;  %p2149_p0 = scmp.ne.s32.totalorder %s1625_s26, %s1621_s25 }
   0xd   : > { %p116_p1 = scmp.eq.s32.totalorder %s115_s30, 0  ;;  %p126_p2 = scmp.eq.s32.totalorder %s1629_s27, 0 }
   0xe   : > { %p1356_p4 = scmp.lt.s32.totalorder %s1629_s27, 2  ;;  %s253_s9 = sand.u32 1, %s1629_s27  }
   0xf   : > { %s1721_s8 = scalar_select %p116_p1, %s1625_s26, %s118_s29  }
  0x10   : > { %p127_p5 = por %p126_p2, %p2149_p0  ;;  %s2150_s10 = sand.u32 1, %s1625_s26  }
  0x11   : > { %2167 = sst [smem:[#allocation17_spill]] %s1721_s8  ;;  %s1730_s11 = sshll.u32 %s2150_s10, 5 }
  0x12   : > { %s1733_s12 = sshll.u32 %s1629_s27, 9  ;;  %s2168_s4 = sld [smem:[#allocation19_spill]] }
  0x13   : > { %s257_s16 = scalar_lea.vmem [#allocation5], %s1730_s11  ;;  %p1742_p6 = pnand %p1356_p4, %p127_p5 }
  0x14   : > { %s264_s17 = sshll.u32 %s257_s16, 4  ;;  %s1748_s19 = scalar_lea.sflag [#allocation6], %s253_s9  ;;  %s1746_s17 = int_to_ptr.vmem [resolvable:$true] %s264_s17 }
  0x15   : > { %p1754_p8 = pneg %p1742_p6 }
  0x18   : > { %s1739_s15 = scalar_lea.hbm %s2168_s4, %s1733_s12  ;;  %s1452_s29 = scalar_lea.hbm %s2168_s4, 1024 }
  0x19   : > { %s1447_s20 = scalar_lea.hbm %s1739_s15, 512  ;;  %p1453_p11 = scmp.lt.s32.totalorder %s1739_s15, %s2168_s4 }
  0x1a   : > { %p1448_p7 = scmp.ne.s32.totalorder %s1739_s15, %s1447_s20  ;;  %p1454_p12 = scmp.lt.s32.totalorder %s1452_s29, %s1447_s20 }
  0x1c   : > { %p1450_p9 = pnand %p1754_p8, %p1448_p7  ;;  %p1455_p13 = por %p1454_p12, %p1453_p11 }
  0x1e   : > { %p1451_p10 = pneg %p1450_p9 }
  0x20   : > { %p1456_p1 = pnand %p1455_p13, %p1451_p10 }
  0x22   : > { %1459 = shalt.err (!%p1456_p1)
}
  0x23   : > { %s1460_s9 = scalar_lea.vmem %s1746_s17, 512  ;;  %s1631_s14 = smov [#allocation5]  }
  0x24   : > { %p1461_p2 = scmp.ne.s32.totalorder %s1746_s17, %s1460_s9  ;;  %s1465_s16 = sshll.u32 %s1631_s14, 4  ;;  %s1466_s16 = int_to_ptr.vmem [resolvable:$false] %s1465_s16 }
  0x25   : > { %s1467_s22 = scalar_lea.vmem %s1466_s16, 1024  ;;  %p1468_p7 = scmp.lt.s32.totalorder %s1746_s17, %s1466_s16 }
  0x26   : > { %p1463_p4 = pnand %p1461_p2, %p1754_p8  ;;  %p1469_p9 = scmp.lt.s32.totalorder %s1467_s22, %s1460_s9 }
  0x28   : > { %p1464_p5 = pneg %p1463_p4  ;;  %p1470_p3 = por %p1469_p9, %p1468_p7 }
  0x2a   : > { %p1471_p0 = pnand %p1470_p3, %p1464_p5 }
  0x2c   : > { %1474 = shalt.err (!%p1471_p0)
}
  0x2d   : > { %s2151_s20 = smov 256   ;;  %s2153_s23 = smov 16  }
  0x2e   : > { %1344 = dma.hbm_to_vmem [thread:$0]  (!%p1742_p6), %s1739_s15, 512, %s1746_s17, %s1748_s19, %s2151_s20, %s2151_s20, %s2153_s23  }
  0x2f   : > { %s1781_s29 = sadd.s32 4294967295, %s1629_s27   ;;  %s1285_s30 = sadd.s32 4294967294, %s1629_s27  }
  0x30   : > { %p131_p0 = scmp.ne.s32.totalorder %s1621_s25, %s1617_s24  ;;  %p2160_p3 = scmp.eq.s32.totalorder %s1781_s29, 0 }
  0x31   : > { %p207_p10 = scmp.eq.s32.totalorder %s1781_s29, 1  ;;  %p213_p11 = scmp.eq.s32.totalorder %s1285_s30, 1 }
  0x32   : > { %p1790_p12 = por %p2160_p3, %p131_p0  ;;  %p1286_p13 = scmp.ge.s32.totalorder %s1629_s27, 1 }
  0x33   : > { %p2172_p1 = scmp.ne.s32.totalorder %s1625_s26, %s1621_s25  ;;  %p1802_p4 = por %p213_p11, %p131_p0 }
  0x34   : > { %s2171_s13 = scalar_select %p1790_p12, 1, 0 }
  0x35   : > { %p1798_p2 = por %p207_p10, %p2172_p1  ;;  %p220_p5 = scmp.lt.s32.totalorder %s1629_s27, 3 }
  0x36   : > { %s2174_s17 = scalar_select %p1802_p4, 1, 0 }
  0x37   : > { %s2173_s15 = scalar_select %p1798_p2, 1, 0 }
  0x38   : > { %2175 = sst [smem:[#allocation18_spill]] %s2174_s17  ;;  %p1807_p7 = pnand %p1286_p13, %p220_p5 }
  0x39   : > { %s1634_s14 = smov [#allocation2]   ;;  %s1817_s10 = scalar_lea.hbm %s2146_s5, %s1733_s12 }
  0x3a   : > { %s2176_s9 = scalar_select %p1807_p7, 1, 0 }
  0x3b   : > { %s239_s16 = sshll.u32 %s1634_s14, 4  ;;  %p1337_p9 = pneg %p1807_p7  ;;  %s1811_s16 = int_to_ptr.vmem [resolvable:$true] %s239_s16 }
  0x3c   : > { %s278_s20 = scalar_lea.vmem [#allocation7], %s1730_s11  ;;  %s1475_s14 = scalar_lea.hbm %s1817_s10, 512 }
  0x3d   : > { %s285_s23 = sshll.u32 %s278_s20, 4  ;;  %p1826_p0 = pnand %p1337_p9, %p2160_p3  ;;  %s1822_s23 = int_to_ptr.vmem [resolvable:$true] %s285_s23 }
  0x3e   : > { %p1476_p10 = scmp.ne.s32.totalorder %s1817_s10, %s1475_s14  ;;  %s1480_s8 = scalar_lea.hbm %s2146_s5, 1024 }
  0x3f   : > { %s2177_s4 = scalar_select %p1826_p0, 1, 0 }
  0x40   : > { %p1478_p11 = pnand %p1476_p10, %p1754_p8  ;;  %p1481_p1 = scmp.lt.s32.totalorder %s1817_s10, %s2146_s5 }
  0x41   : > { %p1482_p5 = scmp.lt.s32.totalorder %s1480_s8, %s1475_s14 }
  0x42   : > { %p1479_p13 = pneg %p1478_p11 }
  0x43   : > { %p1483_p4 = por %p1482_p5, %p1481_p1 }
  0x45   : > { %p1484_p2 = pnand %p1483_p4, %p1479_p13 }
  0x47   : > { %1487 = shalt.err (!%p1484_p2)
}
  0x48   : > { %s1488_s20 = scalar_lea.vmem %s1822_s23, 512  ;;  %s1635_s17 = smov [#allocation7]  }
  0x49   : > { %p1489_p9 = scmp.ne.s32.totalorder %s1822_s23, %s1488_s20  ;;  %s1493_s22 = sshll.u32 %s1635_s17, 4  ;;  %s1494_s22 = int_to_ptr.vmem [resolvable:$false] %s1493_s22 }
  0x4a   : > { %s1495_s30 = scalar_lea.vmem %s1494_s22, 1024  ;;  %p1496_p3 = scmp.lt.s32.totalorder %s1822_s23, %s1494_s22 }
  0x4b   : > { %p1491_p10 = pnand %p1489_p9, %p1754_p8  ;;  %p1497_p12 = scmp.lt.s32.totalorder %s1495_s30, %s1488_s20 }
  0x4d   : > { %p1492_p11 = pneg %p1491_p10  ;;  %p1498_p7 = por %p1497_p12, %p1496_p3 }
  0x4f   : > { %p1499_p0 = pnand %p1498_p7, %p1492_p11 }
  0x51   : > { %1502 = shalt.err (!%p1499_p0)
}
  0x52   : > { %s2178_s27 = smov 16   ;;  %s2179_s28 = smov 256  }
  0x53   : > { %1347 = dma.hbm_to_vmem [thread:$0]  (!%p1742_p6), %s1817_s10, 512, %s1822_s23, %s1748_s19, %s2179_s28, %s2179_s28, %s2178_s27  }
  0x54   : > { %s1858_s14 = scalar_lea.hbm %s2147_s6, %s1733_s12  ;;  %p2180_p3 = scmp.ne.s32.totalorder %s2177_s4, 0 }
  0x55   : > { %s1514_s20 = scalar_lea.vmem %s1811_s16, 32  ;;  %p1522_p0 = scmp.lt.s32.totalorder %s1811_s16, %s1811_s16 }
  0x56   : > { %p1505_p12 = pneg %p2180_p3  ;;  %p1515_p2 = scmp.ne.s32.totalorder %s1811_s16, %s1514_s20 }
  0x57   : > { %p1523_p13 = scmp.lt.s32.totalorder %s1514_s20, %s1514_s20 }
  0x58   : > { %p1517_p4 = pnand %p1515_p2, %p1505_p12 }
  0x59   : > { %p1524_p1 = por %p1523_p13, %p1522_p0 }
  0x5a   : > { %p1518_p7 = pneg %p1517_p4 }
  0x5c   : > { %p1525_p5 = pnand %p1524_p1, %p1518_p7 }
  0x5e   : > { %1528 = shalt.err (!%p1525_p5)
}
  0x5f   : > { %1340 = dma.hbm_to_vmem [thread:$0]  (!%p2180_p3), %s2143_s2, 32, %s1811_s16, [#allocation3]  }
  0x60   : > { %s299_s12 = scalar_lea.vmem [#allocation8], %s1730_s11  ;;  %s2181_s22 = sand.u32 1, %s1625_s26  }
  0x61   : > { %s306_s23 = sshll.u32 %s299_s12, 4  ;;  %s296_s30 = scalar_lea.sflag [#allocation9], %s2181_s22  ;;  %s1873_s23 = int_to_ptr.vmem [resolvable:$true] %s306_s23 }
  0x62   : > { %s1529_s8 = scalar_lea.hbm %s1858_s14, 512  ;;  %s1534_s20 = scalar_lea.hbm %s2147_s6, 1024 }
  0x63   : > { %p1530_p9 = scmp.ne.s32.totalorder %s1858_s14, %s1529_s8  ;;  %p1535_p12 = scmp.lt.s32.totalorder %s1858_s14, %s2147_s6 }
  0x64   : > { %p1536_p3 = scmp.lt.s32.totalorder %s1534_s20, %s1529_s8 }
  0x65   : > { %p1532_p10 = pnand %p1530_p9, %p1754_p8 }
  0x66   : > { %p1537_p2 = por %p1536_p3, %p1535_p12 }
  0x67   : > { %p1533_p11 = pneg %p1532_p10 }
  0x69   : > { %p1538_p4 = pnand %p1537_p2, %p1533_p11 }
  0x6b   : > { %1541 = shalt.err (!%p1538_p4)
}
  0x6c   : > { %s1542_s11 = scalar_lea.vmem %s1873_s23, 512  ;;  %s1636_s16 = smov [#allocation8]  }
  0x6d   : > { %p1543_p7 = scmp.ne.s32.totalorder %s1873_s23, %s1542_s11  ;;  %s1547_s12 = sshll.u32 %s1636_s16, 4  ;;  %s1548_s12 = int_to_ptr.vmem [resolvable:$false] %s1547_s12 }
  0x6e   : > { %s1549_s22 = scalar_lea.vmem %s1548_s12, 1024  ;;  %p1550_p1 = scmp.lt.s32.totalorder %s1873_s23, %s1548_s12 }
  0x6f   : > { %p1545_p0 = pnand %p1543_p7, %p1754_p8  ;;  %p1551_p5 = scmp.lt.s32.totalorder %s1549_s22, %s1542_s11 }
  0x71   : > { %p1546_p13 = pneg %p1545_p0  ;;  %p1552_p9 = por %p1551_p5, %p1550_p1 }
  0x73   : > { %p1553_p10 = pnand %p1552_p9, %p1546_p13 }
  0x75   : > { %1556 = shalt.err (!%p1553_p10)
}
  0x76   : > { %1350 = dma.hbm_to_vmem [thread:$0]  (!%p1742_p6), %s1858_s14, 512, %s1873_s23, %s296_s30, %s2179_s28, %s2179_s28, %s2178_s27  }
  0x77   : > { %p2182_p8 = scmp.ne.s32.totalorder %s2176_s9, 0 }
  0x78   : > { %p2183_p11 = scmp.eq.s32.totalorder (!%p2182_p8), %s1781_s29, 0 }
  0x79   : > { %318 = sbr.rel (%p2182_p8) target bundleno = 810 (0x32a), region = 48 }
  0x7e   : > { %1600 = dma.done.wait (%p2183_p11), [#allocation3], 32   ;;  %p2184_p12 = pmov %p2183_p11 }
  0x7f   : > { %s324_s21 = sand.u32 1, %s1781_s29   ;;  %s1908_s18 = sand.u32 1, %s1621_s25  }
  0x80   : > { %1602 = vsyncadd (%p2184_p12), [#allocation3], 4294967264  ;;  %s1300_s8 = sshll.u32 %s1908_s18, 5  ;;  %s325_s4 = scalar_lea.sflag [#allocation6], %s324_s21 }
  0x81   : > { %s328_s17 = scalar_lea.vmem [#allocation5], %s1300_s8  ;;  %p2185_p6 = scmp.ne.s32.totalorder %s2171_s13, 0 }
  0x83   : > { %1604 = dma.done.wait (%p2185_p6), %s325_s4, 1024  }
  0x84   : > { %1606 = vsyncadd (%p2185_p6), %s325_s4, 4294966272  ;;  %s337_s9 = scalar_lea.vmem [#allocation7], %s1300_s8  ;;  %s343_s27 = scalar_lea.sflag [#allocation9], %s1908_s18 }
  0x85   : > { %s346_s28 = scalar_lea.vmem [#allocation8], %s1300_s8 }
  0x86   : > { %1608 = dma.done.wait (%p2185_p6), %s343_s27, 512  }
  0x87   : > { %1610 = vsyncadd (%p2185_p6), %s343_s27, 4294966784  ;;  %v1637_v0 = vmov 0.0   ;;  %v389_v1 = vld [vmem:[%s328_s17 + $0x8] sm:$0xff]  ;;  %v391_v2 = vld [vmem:[%s328_s17 + $0x18] sm:$0xff]  ;;  %vm418_vm0 = vcmask 130048   ;;  %vm737_vm1 = vcmask 1040384  }
  0x88   : > { %486 = vmatprep.mubr.f32.mxu0 %v1637_v0  ;;  %1035 = vmatprep.mubr.f32.mxu1 %v1637_v0  ;;  %v388_v3 = vld [vmem:[%s328_s17] sm:$0xff]  ;;  %v399_v4 = vmax.f32 %v389_v1, %v391_v2  ;;  %v390_v5 = vld [vmem:[%s328_s17 + $0x10] sm:$0xff]  ;;  %v1922_v6 = vld [vmem:[%s337_s9 + $0x8] sm:$0xff]  ;;  %vm740_vm2 = vcmask 1041408   ;;  %s1638_s13 = smov 15   ;;  %s1639_s14 = smov 113  }
  0x89   : > { %v392_v7 = vmax.f32 %v388_v3, %v390_v5  ;;  %v506_v8 = vld [vmem:[%s337_s9 + $0x18] sm:$0xff]  ;;  %v1924_v9 = vld [vmem:[%s337_s9] sm:$0xff]  ;;  %v505_v10 = vld [vmem:[%s337_s9 + $0x10] sm:$0xff]  ;;  %s1640_s23 = smov 127   ;;  %s1641_s30 = smov 111   ;;  %vm905_vm9 = vcmask 1042432  }
  0x8a   : > { %v400_v11 = vrot.slane %v399_v4, 4  ;;  %v514_v12 = vmax.f32 %v1922_v6, %v506_v8  ;;  %v507_v13 = vmax.f32 %v1924_v9, %v505_v10  ;;  %v1928_v14 = vld [vmem:[%s346_s28 + $0x8] sm:$0xff]  ;;  %v1930_v15 = vld [vmem:[%s346_s28 + $0x18] sm:$0xff]  ;;  %v1932_v16 = vld [vmem:[%s346_s28] sm:$0xff]  ;;  %s1642_s20 = smov 1   ;;  %s1643_s10 = smov 112  }
  0x8b   : > { %v393_v17 = vrot.slane %v392_v7, 4  ;;  %v625_v18 = vmax.f32 %v1928_v14, %v1930_v15  ;;  %v1936_v19 = vld [vmem:[%s346_s28 + $0x10] sm:$0xff]  ;;  %s1644_s19 = smov 17   ;;  %s1645_s11 = smov 16   ;;  %vm913_vm13 = vcmask 1043456   ;;  %vm916_vm14 = vcmask 1046528  }
  0x8c   : > { %v401_v20 = vmax.f32 %v399_v4, %v400_v11  ;;  %v515_v21 = vrot.slane %v514_v12, 4  ;;  %v508_v22 = vrot.slane %v507_v13, 4  ;;  %v618_v23 = vmax.f32 %v1932_v16, %v1936_v19  ;;  %s1303_s22 = sshll.u32 %s1908_s18, 1  ;;  %s1324_s21 = sshll.u32 %s1781_s29, 5 }
  0x8d   : > { %v394_v24 = vmax.f32 %v392_v7, %v393_v17  ;;  %v626_v25 = vrot.slane %v625_v18, 4  ;;  %vm921_vm15 = vcmask 1044480   ;;  %s386_s8 = scalar_lea.vmem [#allocation10], %s1303_s22  ;;  %s1158_s27 = scalar_lea.hbm %s2148_s7, %s1324_s21 }
  0x8e   : > { %v402_v26 = vrot.slane %v401_v20, 2  ;;  %v516_v27 = vmax.f32 %v514_v12, %v515_v21  ;;  %v509_v28 = vmax.f32 %v507_v13, %v508_v22  ;;  %v619_v29 = vrot.slane %v618_v23, 4  ;;  %s1160_s4 = sshll.u32 %s386_s8, 4  ;;  %s1146_s28 = scalar_lea.sflag [#allocation4], %s1908_s18  ;;  %s1161_s4 = int_to_ptr.vmem [resolvable:$true] %s1160_s4 }
  0x8f   : > { %v395_v30 = vrot.slane %v394_v24, 2  ;;  %v627_v31 = vmax.f32 %v625_v18, %v626_v25  ;;  %p2186_p2 = scmp.ne.s32.totalorder %s2173_s15, 0 }
  0x90   : > { %v403_v32 = vmax.f32 %v401_v20, %v402_v26  ;;  %v517_v33 = vrot.slane %v516_v27, 2  ;;  %v510_v34 = vrot.slane %v509_v28, 2  ;;  %v620_v35 = vmax.f32 %v618_v23, %v619_v29 }
  0x91   : > { %v396_v36 = vmax.f32 %v394_v24, %v395_v30  ;;  %v628_v37 = vrot.slane %v627_v31, 2 }
  0x92   : > { %v404_v38 = vrot.slane %v403_v32, 1  ;;  %v518_v39 = vmax.f32 %v516_v27, %v517_v33  ;;  %v511_v40 = vmax.f32 %v509_v28, %v510_v34  ;;  %v621_v41 = vrot.slane %v620_v35, 2 }
  0x93   : > { %v397_v42 = vrot.slane %v396_v36, 1  ;;  %v629_v43 = vmax.f32 %v627_v31, %v628_v37 }
  0x94   : > { %v405_v44 = vmax.f32 %v403_v32, %v404_v38  ;;  %v519_v45 = vrot.slane %v518_v39, 1  ;;  %v512_v46 = vrot.slane %v511_v40, 1  ;;  %v622_v47 = vmax.f32 %v620_v35, %v621_v41 }
  0x95   : > { %v398_v48 = vmax.f32 %v396_v36, %v397_v42  ;;  %v630_v49 = vrot.slane %v629_v43, 1 }
  0x96   : > { %v407_v50 = vsub.f32 %v389_v1, %v405_v44  ;;  %v409_v51 = vsub.f32 %v391_v2, %v405_v44  ;;  %v520_v52 = vmax.f32 %v518_v39, %v519_v45  ;;  %v513_v53 = vmax.f32 %v511_v40, %v512_v46 }
  0x97   : > { %v406_v54 = vsub.f32 %v388_v3, %v398_v48  ;;  %v408_v55 = vsub.f32 %v390_v5, %v398_v48  ;;  %v631_v56 = vmax.f32 %v629_v43, %v630_v49  ;;  %v623_v57 = vrot.slane %v622_v47, 1 }
  0x98   : > { %v412_v58 = vmul.f32 1.442695, %v407_v50  ;;  %v416_v59 = vmul.f32 1.442695, %v409_v51  ;;  %v524_v60 = vsub.f32 %v506_v8, %v520_v52  ;;  %v523_v61 = vsub.f32 %v505_v10, %v513_v53 }
  0x99   : > { %v410_v62 = vmul.f32 1.442695, %v406_v54  ;;  %v414_v63 = vmul.f32 1.442695, %v408_v55  ;;  %v522_v4 = vsub.f32 %v1922_v6, %v520_v52  ;;  %v521_v7 = vsub.f32 %v1924_v9, %v513_v53 }
  0x9a   : > { %1407 = vpow2.f32 %v412_v58  ;;  %v531_v11 = vmul.f32 1.442695, %v524_v60  ;;  %v635_v1 = vsub.f32 %v1930_v15, %v631_v56  ;;  %v529_v2 = vmul.f32 1.442695, %v523_v61  ;;  %v928_v61 = vld [vmem:[%s2142_s1] sm:$0xff] }
  0x9b   : > { %1409 = vpow2.f32 %v416_v59  ;;  %v624_v3 = vmax.f32 %v622_v47, %v623_v57  ;;  %v527_v5 = vmul.f32 1.442695, %v522_v4  ;;  %v633_v12 = vsub.f32 %v1928_v14, %v631_v56  ;;  %v930_v4 = vld [vmem:[%s2142_s1 + $0x10] sm:$0xff] }
  0x9c   : > { %1411 = vpow2.f32 %v410_v62  ;;  %v525_v8 = vmul.f32 1.442695, %v521_v7  ;;  %v642_v6 = vmul.f32 1.442695, %v635_v1  ;;  %v929_v62 = vld [vmem:[%s2142_s1 + $0x8] sm:$0xff] }
  0x9d   : > { %1413 = vpow2.f32 %v414_v63  ;;  %v634_v10 = vsub.f32 %v1936_v19, %v624_v3  ;;  %v632_v13 = vsub.f32 %v1932_v16, %v624_v3  ;;  %v638_v17 = vmul.f32 1.442695, %v633_v12  ;;  %v387_v16 = vld [vmem:[#allocation2] sm:$0x3]  ;;  %v931_v7 = vld [vmem:[%s2142_s1 + $0x18] sm:$0x7] }
  0x9e   : > { %1415 = vpow2.f32 %v531_v11  ;;  %v1646_v63 = vmov 0  }
  0x9f   : > { %1417 = vpow2.f32 %v529_v2  ;;  %v640_v9 = vmul.f32 1.442695, %v634_v10  ;;  %v636_v15 = vmul.f32 1.442695, %v632_v13  ;;  %1405 = vset.pattern.permute.xlu0 %v1646_v63  ;;  %1406 = vset.pattern.permute.xlu1 %v1646_v63  ;;  %v743_v2 = vlaneseq }
  0xa0   : > { %1419 = vpow2.f32 %v527_v5 }
  0xa1   : > { %1421 = vpow2.f32 %v525_v8  ;;  %v1988_v3 = vand.u32 127, %v743_v2  ;;  %v1991_v12 = vshrl.u32 %v743_v2, 7 }
  0xa2   : > { %1423 = vpow2.f32 %v642_v6 }
  0xa3   : > { %1425 = vpow2.f32 %v640_v9  ;;  %v745_v10 = vadd.s32 128, %v1988_v3  ;;  %v777_v13 = vsub.s32 1, %v1991_v12  ;;  %vm746_vm4 = vcmp.ge.s32.totalorder %v1988_v3, 16 }
  0xa4   : > { %1427 = vpow2.f32 %v638_v17  ;;  %v1309_v17 = vld [vmem:[%s2144_s3 + $0x1] ss:$2 sm:$0x3]  ;;  %vm796_vm5 = vcmp.lt.s32.totalorder %v1988_v3, 15  ;;  %vm856_vm6 = vcmp.lt.s32.totalorder %v1988_v3, 111  ;;  %vm827_vm7 = vcmp.lt.s32.totalorder %v1988_v3, 127 }
  0xa5   : > { %1429 = vpow2.f32 %v636_v15  ;;  %vm753_vm3 = vcmp.lt.s32.totalorder %v745_v10, 240  ;;  %v758_v15 = vld [vmem:[%s2144_s3] ss:$2 sm:$0x3]  ;;  %vm818_vm8 = vcmp.lt.s32.totalorder %v1988_v3, 1  ;;  %vm847_vm10 = vcmp.lt.s32.totalorder %v1988_v3, 112 }
  0xa6   : > { %vm836_vm11 = vcmp.lt.s32.totalorder %v1988_v3, 113  ;;  %vm765_vm12 = vcmp.lt.s32.totalorder %v1988_v3, 17 }
  0xa7   : > { %v1408_v18 = vpop.eup %1407 }
  0xa8   : > { %v1410_v14 = vpop.eup %1409 }
  0xa9   : > { %v1412_v20 = vpop.eup %1411  ;;  %450 = vmatprep.subr.mxu0 %v1410_v14  ;;  %v1308_v14 = vsel %vm753_vm3, 1.0, %v1637_v0  ;;  %vm908_vm3 = vcmask 1045504  }
  0xaa   : > { %v1414_v21 = vpop.eup %1413 }
  0xab   : > { %v1416_v19 = vpop.eup %1415  ;;  %451 = vmatpush1.msra.mxu0 %v1414_v21  ;;  %v809_v21 = vrot.slane %v1309_v17, %v777_v13 }
  0xac   : > { %v1418_v22 = vpop.eup %1417  ;;  %452 = vmatprep.subr.mxu0 %v1408_v18  ;;  %v773_v18 = vsub.s32 0, %v1991_v12 }
  0xad   : > { %v1420_v23 = vpop.eup %1419  ;;  %453 = vmatpush1.msra.mxu0 %v1412_v20  ;;  %v2007_v20 = vsel %vm746_vm4, 1.0, %v1637_v0 }
  0xae   : > { %v1422_v24 = vpop.eup %1421  ;;  %1304 = vmatmul.mubr.msk.f32.vlgmr.msra.gmra.mxu0 %vm418_vm0, %v387_v16  ;;  %561 = vmatprep.subr.mxu0 %v1416_v19 }
  0xaf   : > { %v1424_v25 = vpop.eup %1423  ;;  %562 = vmatpush1.msra.mxu0 %v1418_v22  ;;  %597 = vmatprep.mubr.f32.mxu0 %v1637_v0 }
  0xb0   : > { %v1426_v26 = vpop.eup %1425  ;;  %563 = vmatprep.subr.mxu0 %v1420_v23 }
  0xb1   : > { %v1428_v27 = vpop.eup %1427  ;;  %564 = vmatpush1.msra.mxu0 %v1422_v24  ;;  %v2012_v24 = vrot.slane %v758_v15, %v773_v18 }
  0xb2   : > { %v1430_v28 = vpop.eup %1429  ;;  %1305 = vmatmul.mubr.msk.f32.vlgmr.msra.gmra.mxu0 %vm418_vm0, %v387_v16  ;;  %672 = vmatprep.subr.mxu0 %v1424_v25 }
  0xb3   : > { %673 = vmatpush1.msra.mxu0 %v1426_v26  ;;  %708 = vmatprep.mubr.f32.mxu0 %v1637_v0 }
  0xb4   : > { %674 = vmatprep.subr.mxu0 %v1428_v27  ;;  %v2014_v27 = vrot.slane %v758_v15, %v777_v13 }
  0xb5   : > { %675 = vmatpush1.msra.mxu0 %v1430_v28  ;;  %v805_v28 = vrot.slane %v1309_v17, %v773_v18 }
  0xb6   : > { %1306 = vmatmul.mubr.msk.f32.vlgmr.msra.gmra.mxu0 %vm418_vm0, %v387_v16  ;;  %vm787_vm0 = vcmp.lt.s32.totalorder %v1988_v3, 16 }
 0x16e   : > { %v488_v29 = vpop.f32.mrf.mxu0 }
 0x170   : > { %v490_v30 = vpop.f32.mrf.mxu0 }
 0x172   : > { %v599_v31 = vpop.f32.mrf.mxu0 }
 0x173   : > { %1431 = vrcp.f32 %v599_v31 }
 0x174   : > { %1433 = vrcp.f32 %v488_v29  ;;  %v601_v32 = vpop.f32.mrf.mxu0 }
 0x175   : > { %1435 = vrcp.f32 %v601_v32 }
 0x176   : > { %v710_v33 = vpop.f32.mrf.mxu0 }
 0x177   : > { %1437 = vrcp.f32 %v710_v33 }
 0x178   : > { %1439 = vrcp.f32 %v490_v30  ;;  %v712_v34 = vpop.f32.mrf.mxu0 }
 0x179   : > { %1441 = vrcp.f32 %v712_v34 }
 0x180   : > { %v1432_v35 = vpop.eup %1431 }
 0x181   : > { %v1434_v36 = vpop.eup %1433  ;;  %v608_v37 = vrot.slane %v1432_v35, 1 }
 0x182   : > { %v1436_v38 = vpop.eup %1435  ;;  %v497_v42 = vrot.slane %v1434_v36, 1 }
 0x183   : > { %v612_v39 = vmul.f32 %v608_v37, %v599_v31  ;;  %v609_v40 = vrot.slane %v1436_v38, 1 }
 0x184   : > { %v1438_v41 = vpop.eup %1437  ;;  %v501_v50 = vmul.f32 %v497_v42, %v488_v29 }
 0x185   : > { %v1440_v43 = vpop.eup %1439  ;;  %v719_v44 = vrot.slane %v1438_v41, 1  ;;  %v727_v46 = vrot.slane %v612_v39, 7  ;;  %v613_v47 = vmul.f32 %v609_v40, %v601_v32 }
 0x186   : > { %v1442_v45 = vpop.eup %1441  ;;  %v498_v51 = vrot.slane %v1440_v43, 1 }
 0x187   : > { %v723_v48 = vmul.f32 %v719_v44, %v710_v33  ;;  %v720_v49 = vrot.slane %v1442_v45, 1  ;;  %v738_v54 = vsel %vm737_vm1, %v501_v50, %v727_v46  ;;  %v728_v55 = vrot.slane %v613_v47, 7 }
 0x188   : > { %v502_v58 = vmul.f32 %v498_v51, %v490_v30 }
 0x189   : > { %v733_v52 = vrot.slane %v723_v48, 6  ;;  %v724_v53 = vmul.f32 %v720_v49, %v712_v34 }
 0x18a   : > { %v739_v59 = vsel %vm737_vm1, %v502_v58, %v728_v55 }
 0x18b   : > { %v1953_v56 = vsel %vm740_vm2, %v738_v54, %v733_v52  ;;  %v734_v57 = vrot.slane %v724_v53, 6 }
 0x18c   : > { %792 = vrot.lane.b32.xlu1 %v1953_v56, %s1638_s13  ;;  %832 = vrot.lane.b32.xlu0 %v1953_v56, %s1639_s14  ;;  %v883_v42 = vrot.slane %v1953_v56, 4 }
 0x18d   : > { %v1959_v60 = vsel %vm740_vm2, %v739_v59, %v734_v57 }
 0x18e   : > { %v884_v47 = vrot.slane %v1959_v60, 4 }
 0x190   : > { %823 = vrot.lane.b32.xlu0 %v1953_v56, %s1640_s23  ;;  %794 = vrot.lane.b32.xlu1 %v1959_v60, %s1638_s13  ;;  %s1557_s13 = scalar_lea.vmem %s1161_s4, 32 }
 0x191   : > { %p1558_p3 = scmp.ne.s32.totalorder %s1161_s4, %s1557_s13 }
 0x193   : > { %p1559_p4 = pnand %p1558_p3, %p2186_p2 }
 0x194   : > { %852 = vrot.lane.b32.xlu0 %v1953_v56, %s1641_s30  ;;  %825 = vrot.lane.b32.xlu1 %v1959_v60, %s1640_s23 }
 0x195   : > { %p1560_p7 = pneg %p1559_p4 }
 0x198   : > { %814 = vrot.lane.b32.xlu0 %v1953_v56, %s1642_s20  ;;  %854 = vrot.lane.b32.xlu1 %v1959_v60, %s1641_s30 }
 0x19c   : > { %843 = vrot.lane.b32.xlu0 %v1953_v56, %s1643_s10  ;;  %816 = vrot.lane.b32.xlu1 %v1959_v60, %s1642_s20 }
 0x1a0   : > { %845 = vrot.lane.b32.xlu1 %v1959_v60, %s1643_s10  ;;  %834 = vrot.lane.b32.xlu0 %v1959_v60, %s1639_s14  ;;  %s1648_s14 = smov [#allocation10]  }
 0x1a1   : > { %s1561_s29 = sshll.u32 %s1648_s14, 4  ;;  %s1562_s29 = int_to_ptr.vmem [resolvable:$false] %s1561_s29 }
 0x1a2   : > { %s1563_s23 = scalar_lea.vmem %s1562_s29, 64  ;;  %p1564_p0 = scmp.lt.s32.totalorder %s1161_s4, %s1562_s29 }
 0x1a3   : > { %p1565_p13 = scmp.lt.s32.totalorder %s1563_s23, %s1557_s13 }
 0x1a4   : > { %763 = vrot.lane.b32.xlu1 %v1959_v60, %s1644_s19  ;;  %761 = vrot.lane.b32.xlu0 %v1953_v56, %s1644_s19 }
 0x1a5   : > { %p1566_p1 = por %p1565_p13, %p1564_p0 }
 0x1a7   : > { %p1567_p5 = pnand %p1566_p1, %p1560_p7 }
 0x1a8   : > { %785 = vrot.lane.b32.xlu1 %v1959_v60, %s1645_s11  ;;  %783 = vrot.lane.b32.xlu0 %v1953_v56, %s1645_s11 }
 0x1ac   : > { %934 = vperm.xlu0 %1405, %v928_v61   ;;  %939 = vperm.xlu1 %1406, %v929_v62  }
 0x1b0   : > { %944 = vperm.xlu1 %1406, %v930_v4   ;;  %949 = vperm.xlu0 %1405, %v931_v7  }
 0x1fe   : > { %v793_v11 = vpop.permute.xlu1 %792  ;;  %v833_v1 = vpop.permute.xlu0 %832 }
 0x202   : > { %v824_v5 = vpop.permute.xlu0 %823  ;;  %v795_v8 = vpop.permute.xlu1 %794 }
 0x203   : > { %v798_v22 = vsel %vm796_vm5, %v795_v8, %v793_v11  ;;  %v797_v29 = vsel %vm796_vm5, %v793_v11, %v795_v8 }
 0x204   : > { %v799_v30 = vmul.f32 %v2007_v20, %v798_v22  ;;  %v2032_v40 = vmul.f32 %v809_v21, %v797_v29 }
 0x206   : > { %v853_v6 = vpop.permute.xlu0 %852  ;;  %v826_v9 = vpop.permute.xlu1 %825  ;;  %v2039_v43 = vmul.f32 %v805_v28, %v799_v30  ;;  %v872_v56 = vrot.slane %v2032_v40, 2 }
 0x207   : > { %v828_v34 = vsel %vm827_vm7, %v824_v5, %v826_v9  ;;  %v829_v41 = vsel %vm827_vm7, %v826_v9, %v824_v5 }
 0x208   : > { %v830_v44 = vmul.f32 %v828_v34, %v805_v28  ;;  %v831_v52 = vmul.f32 %v829_v41, %v809_v21  ;;  %v871_v58 = vrot.slane %v2039_v43, 2 }
 0x20a   : > { %v815_v19 = vpop.permute.xlu0 %814  ;;  %v855_v16 = vpop.permute.xlu1 %854  ;;  %v889_v63 = vrot.slane %v830_v44, 1 }
 0x20b   : > { %v858_v23 = vsel %vm856_vm6, %v855_v16, %v853_v6  ;;  %v857_v25 = vsel %vm856_vm6, %v853_v6, %v855_v16 }
 0x20c   : > { %v860_v26 = vmul.f32 %v1308_v14, %v858_v23  ;;  %v2024_v35 = vmul.f32 %v857_v25, %v805_v28 }
 0x20e   : > { %v844_v31 = vpop.permute.xlu0 %843  ;;  %v817_v32 = vpop.permute.xlu1 %816  ;;  %v2020_v33 = vmul.f32 %v860_v26, %v809_v21 }
 0x20f   : > { %v819_v36 = vsel %vm818_vm8, %v815_v19, %v817_v32  ;;  %v820_v37 = vsel %vm818_vm8, %v817_v32, %v815_v19 }
 0x210   : > { %v821_v38 = vmul.f32 %v820_v37, %v2012_v24  ;;  %v822_v39 = vmul.f32 %v819_v36, %v2014_v27  ;;  %1310 = vmatprep.subr.msk.mxu1 %vm905_vm9, %v2020_v33  ;;  %v924_v36 = vld [vmem:[%s2141_s0] sm:$0xff] }
 0x211   : > { %1311 = vmatpush1.msk.msra.mxu1 %vm905_vm9, %v2024_v35 }
 0x212   : > { %v846_v45 = vpop.permute.xlu1 %845  ;;  %v835_v46 = vpop.permute.xlu0 %834  ;;  %v878_v48 = vrot.slane %v822_v39, 7  ;;  %v877_v53 = vrot.slane %v821_v38, 7  ;;  %v926_v38 = vld [vmem:[%s2141_s0 + $0x10] sm:$0xff]  ;;  %v927_v39 = vld [vmem:[%s2141_s0 + $0x18] sm:$0x7] }
 0x213   : > { %v849_v49 = vsel %vm847_vm10, %v846_v45, %v844_v31  ;;  %v837_v50 = vsel %vm836_vm11, %v833_v1, %v835_v46  ;;  %v838_v51 = vsel %vm836_vm11, %v835_v46, %v833_v1  ;;  %v848_v4 = vsel %vm847_vm10, %v844_v31, %v846_v45 }
 0x214   : > { %v840_v54 = vmul.f32 %v1308_v14, %v838_v51  ;;  %v841_v55 = vmul.f32 %v837_v50, %v2012_v24  ;;  %v851_v57 = vmul.f32 %v1308_v14, %v849_v49  ;;  %v912_v11 = vsel %vm737_vm1, %v872_v56, %v878_v48 }
 0x215   : > { %v890_v1 = vrot.slane %v831_v52, 1  ;;  %v911_v8 = vsel %vm737_vm1, %v871_v58, %v877_v53  ;;  %v901_v9 = vrot.slane %v848_v4, 3  ;;  %v915_v21 = vsel %vm913_vm13, %v912_v11, %v884_v47 }
 0x216   : > { %v842_v59 = vmul.f32 %v840_v54, %v2014_v27  ;;  %v895_v60 = vrot.slane %v841_v55, 6  ;;  %v764_v61 = vpop.permute.xlu1 %763  ;;  %v762_v62 = vpop.permute.xlu0 %761  ;;  %v902_v10 = vrot.slane %v851_v57, 3  ;;  %v914_v3 = vsel %vm913_vm13, %v911_v8, %v883_v42 }
 0x217   : > { %v767_v7 = vsel %vm765_vm12, %v764_v61, %v762_v62  ;;  %v766_v13 = vsel %vm765_vm12, %v762_v62, %v764_v61  ;;  %v918_v29 = vsel %vm916_vm14, %v915_v21, %v890_v1  ;;  %v917_v32 = vsel %vm916_vm14, %v914_v3, %v889_v63 }
 0x218   : > { %v896_v5 = vrot.slane %v842_v59, 6  ;;  %v919_v6 = vsel %vm740_vm2, %v889_v63, %v895_v60  ;;  %v768_v17 = vmul.f32 %v2007_v20, %v767_v7  ;;  %v782_v23 = vmul.f32 %v2014_v27, %v766_v13 }
 0x219   : > { %v2070_v28 = vsel %vm921_vm15, %v919_v6, %v901_v9  ;;  %vm952_vm1 = vcmask 220160  }
 0x21a   : > { %v786_v15 = vpop.permute.xlu1 %785  ;;  %v784_v18 = vpop.permute.xlu0 %783  ;;  %v920_v14 = vsel %vm740_vm2, %v890_v1, %v896_v5  ;;  %v781_v30 = vmul.f32 %v2012_v24, %v768_v17  ;;  %v925_v24 = vld [vmem:[%s2141_s0 + $0x8] sm:$0xff]  ;;  %vm1142_vm2 = vcmp.lt.s32.totalorder %v743_v2, 256 }
 0x21b   : > { %v788_v19 = vsel %vm787_vm0, %v784_v18, %v786_v15  ;;  %v789_v16 = vsel %vm787_vm0, %v786_v15, %v784_v18  ;;  %v2063_v22 = vsel %vm921_vm15, %v920_v14, %v902_v10 }
 0x21c   : > { %v790_v25 = vmul.f32 %v2007_v20, %v789_v16  ;;  %v866_v26 = vrot.slane %v788_v19, 5  ;;  %997 = vmatprep.subr.mxu1 %v2063_v22 }
 0x21d   : > { %998 = vmatpush1.msra.mxu1 %v2070_v28 }
 0x21e   : > { %v865_v31 = vrot.slane %v790_v25, 5  ;;  %999 = vmatprep.subr.mxu1 %v918_v29  ;;  %v907_v27 = vsel %vm905_vm9, %v782_v23, %v866_v26 }
 0x21f   : > { %1000 = vmatpush1.msra.mxu1 %v917_v32  ;;  %v910_v20 = vsel %vm908_vm3, %v907_v27, %v872_v56 }
 0x220   : > { %1001 = vmatprep.subr.mxu1 %v910_v20  ;;  %v906_v34 = vsel %vm905_vm9, %v781_v30, %v865_v31 }
 0x221   : > { %v909_v37 = vsel %vm908_vm3, %v906_v34, %v871_v58 }
 0x222   : > { %1002 = vmatpush1.msra.mxu1 %v909_v37 }
 0x223   : > { %1312 = vmatmul.mubr.msk.f32.vlgmr.msra.gmra.mxu1 %vm952_vm1, %v924_v36 }
 0x224   : > { %1041 = vmatprep.mubr.f32.mxu1 %v1637_v0 }
 0x227   : > { %1313 = vmatmul.mubr.msk.f32.gmra.mxu1 %vm952_vm1, %v925_v24  ;;  %v940_v41 = vpop.permute.xlu1 %939  ;;  %v935_v43 = vpop.permute.xlu0 %934 }
 0x228   : > { %1047 = vmatprep.mubr.f32.mxu1 %v1637_v0 }
 0x22b   : > { %1314 = vmatmul.mubr.msk.f32.gmra.mxu1 %vm952_vm1, %v926_v38  ;;  %v945_v47 = vpop.permute.xlu1 %944  ;;  %v950_v58 = vpop.permute.xlu0 %949 }
 0x22c   : > { %1053 = vmatprep.mubr.f32.mxu1 %v1637_v0 }
 0x22f   : > { %1315 = vmatmul.mubr.msk.f32.gmra.mxu1 %vm952_vm1, %v927_v39 }
 0x2e3   : > { %v1037_v40 = vpop.f32.mrf.mxu1 }
 0x2e4   : > { %v1038_v48 = vadd.f32 %v1037_v40, %v935_v43 }
 0x2e5   : > { %v1039_v42 = vpop.f32.mrf.mxu1 }
 0x2e6   : > { %v1040_v51 = vadd.f32 %v1039_v42, %v935_v43  ;;  %v1060_v54 = vmax.f32 %v1038_v48, 0.0 }
 0x2e7   : > { %v1043_v44 = vpop.f32.mrf.mxu1 }
 0x2e8   : > { %v1044_v45 = vadd.f32 %v1043_v44, %v940_v41  ;;  %v1061_v60 = vmax.f32 %v1040_v51, 0.0  ;;  %v1090_v7 = vmul.f32 %v1060_v54, %v909_v37 }
 0x2e9   : > { %v1045_v46 = vpop.f32.mrf.mxu1 }
 0x2ea   : > { %v1046_v49 = vadd.f32 %v1045_v46, %v940_v41  ;;  %v1062_v53 = vmax.f32 %v1044_v45, 0.0  ;;  %v1091_v6 = vmul.f32 %v1061_v60, %v910_v20 }
 0x2eb   : > { %v1049_v50 = vpop.f32.mrf.mxu1 }
 0x2ec   : > { %v1050_v52 = vadd.f32 %v1049_v50, %v945_v47  ;;  %v1063_v55 = vmax.f32 %v1046_v49, 0.0  ;;  %v1068_v62 = vadd.f32 %v1062_v53, %v1060_v54  ;;  %v1092_v5 = vmul.f32 %v1062_v53, %v917_v32 }
 0x2ed   : > { %v1051_v0 = vpop.f32.mrf.mxu1 }
 0x2ee   : > { %v1064_v56 = vmax.f32 %v1050_v52, 0.0  ;;  %v1052_v57 = vadd.f32 %v1051_v0, %v945_v47  ;;  %v1078_v8 = vadd.f32 %v1063_v55, %v1061_v60  ;;  %v1093_v10 = vmul.f32 %v1063_v55, %v918_v29 }
 0x2ef   : > { %v1055_v59 = vpop.f32.mrf.mxu1  ;;  %v1098_v23 = vadd.f32 %v1092_v5, %v1090_v7  ;;  %v1647_v52 = vmov 1966171168  }
 0x2f0   : > { %v1056_v61 = vadd.f32 %v1055_v59, %v950_v58  ;;  %v1065_v63 = vmax.f32 %v1052_v57, 0.0  ;;  %v1069_v13 = vadd.f32 %v1068_v62, %v1064_v56  ;;  %v1094_v18 = vmul.f32 %v1064_v56, %v2070_v28 }
 0x2f1   : > { %v1057_v4 = vpop.f32.mrf.mxu1  ;;  %v1108_v25 = vadd.f32 %v1093_v10, %v1091_v6  ;;  %v1126_v53 = vunpack.c.l.s4 %v1647_v52 }
 0x2f2   : > { %v1066_v11 = vmax.f32 %v1056_v61, 0.0  ;;  %v1058_v1 = vadd.f32 %v1057_v4, %v950_v58  ;;  %v1079_v14 = vadd.f32 %v1078_v8, %v1065_v63  ;;  %v1095_v21 = vmul.f32 %v1065_v63, %v2063_v22 }
 0x2f3   : > { %v1127_v55 = vunpack.c.0.s8 %v1126_v53 }
 0x2f4   : > { %v1070_v9 = vsel %vm905_vm9, %v1066_v11, 0.0  ;;  %v1096_v17 = vmul.f32 %v1066_v11, %v2024_v35  ;;  %v1067_v15 = vmax.f32 %v1058_v1, 0.0  ;;  %v1099_v35 = vadd.f32 %v1098_v23, %v1094_v18 }
 0x2f5   : > { %v1071_v19 = vadd.f32 %v1070_v9, %v1069_v13  ;;  %v1109_v32 = vadd.f32 %v1108_v25, %v1095_v21  ;;  %v1130_v62 = vsub.s32 %v1127_v55, %v1991_v12 }
 0x2f6   : > { %v1080_v16 = vsel %vm905_vm9, %v1067_v15, 0.0  ;;  %v1097_v3 = vmul.f32 %v1067_v15, %v2020_v33  ;;  %v1100_v30 = vsel %vm905_vm9, %v1096_v17, 0.0 }
 0x2f7   : > { %v1072_v26 = vrot.slane %v1071_v19, 4  ;;  %v1081_v29 = vadd.f32 %v1080_v16, %v1079_v14  ;;  %v1101_v34 = vadd.f32 %v1100_v30, %v1099_v35 }
 0x2f8   : > { %v1110_v31 = vsel %vm905_vm9, %v1097_v3, 0.0 }
 0x2f9   : > { %v1073_v27 = vadd.f32 %v1072_v26, %v1071_v19  ;;  %v1082_v28 = vrot.slane %v1081_v29, 4  ;;  %v1111_v36 = vadd.f32 %v1110_v31, %v1109_v32  ;;  %v1102_v33 = vrot.slane %v1101_v34, 4 }
 0x2fb   : > { %v1074_v20 = vrot.slane %v1073_v27, 2  ;;  %v1083_v22 = vadd.f32 %v1082_v28, %v1081_v29  ;;  %v1112_v40 = vrot.slane %v1111_v36, 4  ;;  %v1103_v44 = vadd.f32 %v1102_v33, %v1101_v34 }
 0x2fd   : > { %v1075_v37 = vadd.f32 %v1074_v20, %v1073_v27  ;;  %v1084_v24 = vrot.slane %v1083_v22, 2  ;;  %v1113_v46 = vadd.f32 %v1112_v40, %v1111_v36  ;;  %v1104_v48 = vrot.slane %v1103_v44, 2 }
 0x2ff   : > { %v1076_v38 = vrot.slane %v1075_v37, 1  ;;  %v1085_v39 = vadd.f32 %v1084_v24, %v1083_v22  ;;  %v1114_v49 = vrot.slane %v1113_v46, 2  ;;  %v1105_v50 = vadd.f32 %v1104_v48, %v1103_v44 }
 0x301   : > { %v1077_v41 = vadd.f32 %v1076_v38, %v1075_v37  ;;  %v1086_v42 = vrot.slane %v1085_v39, 1  ;;  %v1115_v51 = vadd.f32 %v1114_v49, %v1113_v46  ;;  %v1106_v0 = vrot.slane %v1105_v50, 1 }
 0x303   : > { %v1088_v43 = vadd.f32 1e-08, %v1077_v41  ;;  %v1087_v45 = vadd.f32 %v1086_v42, %v1085_v39  ;;  %v1116_v54 = vrot.slane %v1115_v51, 1  ;;  %v1107_v57 = vadd.f32 %v1106_v0, %v1105_v50 }
 0x305   : > { %1443 = vrcp.f32 %v1088_v43  ;;  %v1089_v47 = vadd.f32 1e-08, %v1087_v45  ;;  %v1117_v58 = vadd.f32 %v1116_v54, %v1115_v51 }
 0x307   : > { %1445 = vrcp.f32 %v1089_v47 }
 0x312   : > { %v1444_v56 = vpop.eup %1443 }
 0x313   : > { %v1120_v60 = vmul.f32 %v1444_v56, %v1107_v57 }
 0x314   : > { %v1446_v59 = vpop.eup %1445 }
 0x315   : > { %v1121_v61 = vmul.f32 %v1446_v59, %v1117_v58 }
 0x317   : > { %v1124_v63 = vcombine.low %v1120_v60, %v1121_v61 }
 0x319   : > { %v1131_v4 = vrot.slane %v1124_v63, %v1130_v62 }
 0x31b   : > { %v1138_v7 = vrot.slane %v1131_v4, %v1130_v62 }
 0x31d   : > { %1144 = vst.msk [vmem:[%s386_s8] sm:$0x3] %vm1142_vm2, %v1138_v7 }
 0x31e   : > { %1570 = shalt.err (!%p1567_p5)
}
 0x31f   : > { %s1571_s30 = scalar_lea.hbm %s1158_s27, 32  ;;  %s1575_s10 = scalar_lea.hbm %s2148_s7, 64 }
 0x320   : > { %p1572_p9 = scmp.ne.s32.totalorder %s1158_s27, %s1571_s30  ;;  %p1576_p11 = scmp.lt.s32.totalorder %s1158_s27, %s2148_s7 }
 0x321   : > { %p1577_p12 = scmp.lt.s32.totalorder %s1575_s10, %s1571_s30 }
 0x322   : > { %p1573_p10 = pnand %p1572_p9, %p2186_p2 }
 0x323   : > { %p1578_p6 = por %p1577_p12, %p1576_p11 }
 0x324   : > { %p1574_p8 = pneg %p1573_p10 }
 0x326   : > { %p1579_p3 = pnand %p1578_p6, %p1574_p8 }
 0x328   : > { %1582 = shalt.err (!%p1579_p3)
}
 0x329   : > { %1335 = dma.vmem_to_hbm [thread:$0]  (%p2186_p2), %s1161_s4, 32, %s1158_s27, %s1146_s28  }
 0x32a PF: > { %s2187_s16 = sld [smem:[#allocation18_spill]]  ;;  %s1172_s22 = sand.u32 1, %s1617_s24  }
 0x32b   : > { %s2188_s12 = sld [smem:[#allocation15_spill]]  ;;  %s1173_s21 = scalar_lea.sflag [#allocation4], %s1172_s22 }
 0x330   : > { %p2189_p4 = scmp.ne.s32.totalorder %s2187_s16, 0 }
 0x331   : > { %p2190_p7 = scmp.ge.s32.totalorder %s2188_s12, 2 }
 0x333   : > { %p1352_p0 = pnand %p2190_p7, %p2189_p4 }
 0x335   : > { %p1353_p13 = pneg %p1352_p0 }
 0x337   : > { %1612 = dma.done.wait (%p1353_p13), %s1173_s21, 32  }
 0x338   : > { %1614 = vsyncadd (%p1353_p13), %s1173_s21, 4294967264  ;;  %s2191_s27 = sld [smem:[#allocation16_spill]]  ;;  %s2193_s24 = smov %s1621_s25 }
 0x339   : > { %s2192_s8 = sld [smem:[#allocation17_spill]]  ;;  %s2194_s25 = smov %s1625_s26 }
 0x33e   : > { %p24_p1 = scmp.ge.s32.totalorder %s2191_s27, 4  }
 0x33f   : > { %s2195_s26 = smov %s2192_s8 }
 0x340   :  { %26 = sbr.rel (!%p24_p1) target bundleno = 10 (0xa), region = 123 }
 0x345   :  { %1178 = vsyncpa [#allocation3], 1 }
 0x346   :  { %1180 = vsyncpa [#allocation3 + $0x1], 1 }
 0x347   :  { %1181 = vsyncpa [#allocation6], 1 }
 0x348   :  { %1183 = vsyncpa [#allocation6 + $0x1], 1 }
 0x349   :  { %1184 = vsyncpa [#allocation9], 1 }
 0x34a   :  { %1186 = vsyncpa [#allocation9 + $0x1], 1 }
 0x34b   :  { %1187 = vsyncpa [#allocation4], 1 }
 0x34c   :  { %1189 = vsyncpa [#allocation4 + $0x1], 1 }

</bundles_post_ra>
